<compile_context>
chip_gen: v7x
topology: tpu7x:2x2x1
jax: 0.10.0
libtpu: 0.0.40
codegen_flags: <defaults>
</compile_context>

<pallas_src>
import math
import numpy as np
import jax
import jax.numpy as jnp
from jax.experimental import pallas as pl
from jax.experimental.pallas import tpu as pltpu


# ----------------------------- config helpers ------------------------------
def round_filters(width_coefficient: float, depth_divisor: int, num_channels: int) -> int:
    """Same math as modeling_efficientnet.round_filters."""
    divisor = depth_divisor
    num_channels *= width_coefficient
    new_dim = max(divisor, int(num_channels + divisor / 2) // divisor * divisor)
    if new_dim < 0.9 * num_channels:
        new_dim += divisor
    return int(new_dim)


def _round_up(x: int, m: int) -> int:
    return ((x + m - 1) // m) * m


# ------------------------------ Pallas kernel -------------------------------
def _stem_kernel(w_ref, p_ref, scale_ref, bias_ref, o_ref):
    # w_ref:     [C_out, K_pad]  bf16  (conv weight, cols ordered (ic, kh, kw))
    # p_ref:     [K_pad, TILE_M] bf16  (im2col'd padded input, transposed)
    # scale_ref: [C_out, 1]      f32   (gamma / sqrt(running_var + eps))
    # bias_ref:  [C_out, 1]      f32   (beta - running_mean * scale)
    # o_ref:     [C_out, TILE_M] bf16  (lane-dense output tile)
    y = jnp.dot(w_ref[...], p_ref[...],
                preferred_element_type=jnp.float32)          # conv as matmul (MXU, f32 acc)
    y = y * scale_ref[...] + bias_ref[...]                   # fused BatchNorm (eval affine)
    o_ref[...] = (y * jax.nn.sigmoid(y)).astype(o_ref.dtype)  # SiLU, cast to bf16 on store


def _choose_tile_m(M: int, k_pad: int, c_out: int, out_itemsize: int) -> int:
    """Big tiles (amortize ~0.35us/step + large contiguous DMAs), but keep
    >=4 tiles for megacore splitting on v7x and bound VMEM (64 MiB/TC on v7x)."""
    m128 = _round_up(M, 128)
    if m128 <= 512:
        return m128
    tile = min(32768, _round_up(pl.cdiv(M, 4), 128), m128)
    # Double-buffered patches + output bytes per output column (bf16 patches).
    per_col = 2 * (k_pad * 2 + c_out * out_itemsize)
    max_tile = max(128, ((40 * 1024 * 1024) // per_col) // 128 * 128)
    return min(tile, max_tile)


def _fused_conv_bn_act(w_t, patches_t, scale, bias, tile_m, out_dtype):
    C_out, K_pad = w_t.shape
    _, M_pad = patches_t.shape
    n_tiles = M_pad // tile_m
    out_itemsize = jnp.dtype(out_dtype).itemsize

    cost = pl.CostEstimate(
        flops=2 * C_out * K_pad * M_pad,
        transcendentals=C_out * M_pad,
        bytes_accessed=(patches_t.size * 2 + w_t.size * 2
                        + C_out * M_pad * out_itemsize
                        + (scale.size + bias.size) * 4),
    )

    # Double-buffered patch + output tiles plus resident weights/BN params.
    vmem_need = (2 * tile_m * (K_pad * 2 + C_out * out_itemsize)
                 + C_out * K_pad * 2 + 2 * C_out * 4)
    vmem_limit = int(min(48 * 1024 * 1024, max(16 * 1024 * 1024, 2 * vmem_need)))

    return pl.pallas_call(
        _stem_kernel,
        out_shape=jax.ShapeDtypeStruct((C_out, M_pad), out_dtype),
        grid_spec=pltpu.PrefetchScalarGridSpec(
            num_scalar_prefetch=0,
            grid=(n_tiles,),
            in_specs=[
                pl.BlockSpec((C_out, K_pad), lambda i: (0, 0)),   # resident weights
                pl.BlockSpec((K_pad, tile_m), lambda i: (0, i)),  # streamed patch tiles
                pl.BlockSpec((C_out, 1), lambda i: (0, 0)),       # resident BN scale
                pl.BlockSpec((C_out, 1), lambda i: (0, 0)),       # resident BN bias
            ],
            out_specs=pl.BlockSpec((C_out, tile_m), lambda i: (0, i)),
        ),
        compiler_params=pltpu.CompilerParams(
            dimension_semantics=("parallel",),        # split M tiles across TCs (v7x)
            vmem_limit_bytes=vmem_limit,              # explicit: v5e default is 16 MiB
        ),
        cost_estimate=cost,
    )(w_t, patches_t, scale, bias)


# ------------------------------ module wrapper -------------------------------
def efficientnet_embeddings(pixel_values, conv_w, gamma, beta, running_mean,
                            running_var, eps, *, out_dtype=jnp.bfloat16,
                            transpose_to_nchw=True):
    """
    pixel_values: [B, C_in, H, W]      (NCHW, like PyTorch)
    conv_w:       [C_out, C_in, 3, 3]  (PyTorch Conv2d weight layout)
    returns:      [B, C_out, H_out, W_out] (bf16) — or the channel-major slab
                  [C_out, B, H_out, W_out] when transpose_to_nchw=False.
    """
    B, C_in, H, W = pixel_values.shape
    C_out = conv_w.shape[0]
    KH = KW = 3
    STRIDE = 2

    # nn.ZeroPad2d(padding=(0, 1, 0, 1)): (left=0, right=1, top=0, bottom=1).
    # Cast to bf16 first so the whole im2col chain moves half the bytes.
    x = jnp.pad(pixel_values.astype(jnp.bfloat16), ((0, 0), (0, 0), (0, 1), (0, 1)))
    Hp, Wp = H + 1, W + 1
    H_out = (Hp - KH) // STRIDE + 1
    W_out = (Wp - KW) // STRIDE + 1

    # im2col (transposed): patches_t[(ic,kh,kw), (b,oh,ow)] = x[b,ic,2oh+kh,2ow+kw]
    # TODO(synk): still materialized in HBM (~2.25x the bf16 input); removing it
    # needs a halo-aware manual-DMA kernel over overlapping stride-2 row windows.
    taps = [x[:, :, kh:kh + STRIDE * H_out:STRIDE, kw:kw + STRIDE * W_out:STRIDE]
            for kh in range(KH) for kw in range(KW)]              # each [B, C_in, H_out, W_out]
    p = jnp.stack(taps, axis=2)                                    # [B, C_in, 9, H_out, W_out]
    p = jnp.transpose(p, (1, 2, 0, 3, 4))                          # [C_in, 9, B, H_out, W_out]

    K = C_in * KH * KW
    M = B * H_out * W_out
    patches_t = p.reshape(K, M)

    # weight [C_out, C_in, kh, kw] -> [C_out, (ic, kh, kw)]  (matches patches_t row order)
    w_t = conv_w.reshape(C_out, K).astype(jnp.bfloat16)

    # K is zero-padded to a 16-multiple (bf16 sublane packing): the padded rows are
    # guaranteed zeros, keeping the contraction exact without relying on Mosaic's
    # handling of unaligned contracting dims.  Costs ~(K_pad-K)/K extra patch bytes.
    K_pad = _round_up(K, 16)
    out_itemsize = jnp.dtype(out_dtype).itemsize
    tile_m = _choose_tile_m(M, K_pad, C_out, out_itemsize)
    M_pad = _round_up(M, tile_m)

    patches_t = jnp.pad(patches_t, ((0, K_pad - K), (0, M_pad - M)))
    w_t = jnp.pad(w_t, ((0, 0), (0, K_pad - K)))

    # BatchNorm2d eval mode folded to an affine: y = conv * scale + bias (f32).
    # TODO(synk): training-mode batch statistics / running-stat updates are not modeled.
    scale = (gamma / jnp.sqrt(running_var + eps)).astype(jnp.float32)
    bias = (beta - running_mean * scale).astype(jnp.float32)

    out_t = _fused_conv_bn_act(w_t, patches_t,
                               scale.reshape(C_out, 1), bias.reshape(C_out, 1),
                               tile_m, out_dtype)                  # [C_out, M_pad] bf16

    # Padded M columns hold SiLU(bias) garbage — the slice below removes them.
    out = out_t[:, :M].reshape(C_out, B, H_out, W_out)
    if transpose_to_nchw:
        # NCHW for PyTorch layout parity; done on the bf16 output (half the bytes).
        return jnp.transpose(out, (1, 0, 2, 3))
    return out


# ------------------------------ reference (pure JAX) -------------------------
def _reference(pixel_values, conv_w, gamma, beta, running_mean, running_var, eps):
    x = jnp.pad(pixel_values, ((0, 0), (0, 0), (0, 1), (0, 1)))
    y = jax.lax.conv_general_dilated(
        x.astype(jnp.float32), conv_w.astype(jnp.float32),
        window_strides=(2, 2), padding="VALID",
        dimension_numbers=("NCHW", "OIHW", "NCHW"),
        precision=jax.lax.Precision.HIGHEST)
    scale = gamma / jnp.sqrt(running_var + eps)
    bias = beta - running_mean * scale
    y = y * scale[None, :, None, None] + bias[None, :, None, None]
    return y * jax.nn.sigmoid(y)


# ---------------------------------- main -------------------------------------
if __name__ == "__main__":
    # Small synthetic "EfficientNetConfig": num_channels=4, width_coefficient=1.0,
    # depth_divisor=8, batch_norm_eps=1e-3, hidden_act="swish".
    B, C_IN, H, W = 2, 4, 16, 16
    WIDTH_COEFF, DEPTH_DIVISOR, BN_EPS = 1.0, 8, 1e-3
    C_OUT = round_filters(WIDTH_COEFF, DEPTH_DIVISOR, 32)  # -> 32

    key = jax.random.PRNGKey(0)
    k_x, k_w, k_g, k_b, k_m, k_v = jax.random.split(key, 6)

    pixel_values = jax.random.normal(k_x, (B, C_IN, H, W), dtype=jnp.float32)
    fan_in = C_IN * 3 * 3
    conv_w = jax.random.normal(k_w, (C_OUT, C_IN, 3, 3), dtype=jnp.float32) / math.sqrt(fan_in)
    gamma = 1.0 + 0.1 * jax.random.normal(k_g, (C_OUT,), dtype=jnp.float32)
    beta = 0.1 * jax.random.normal(k_b, (C_OUT,), dtype=jnp.float32)
    running_mean = 0.1 * jax.random.normal(k_m, (C_OUT,), dtype=jnp.float32)
    running_var = jnp.abs(1.0 + 0.1 * jax.random.normal(k_v, (C_OUT,), dtype=jnp.float32))

    out = efficientnet_embeddings(pixel_values, conv_w, gamma, beta,
                                  running_mean, running_var, BN_EPS)
    out = jax.block_until_ready(out)

    ref = _reference(pixel_values, conv_w, gamma, beta, running_mean,
                     running_var, BN_EPS)
    assert out.shape == (B, C_OUT, H // 2, W // 2), out.shape
    # bf16 matmul operands + bf16 output quantization vs f32 reference.
    np.testing.assert_allclose(np.asarray(out, dtype=np.float32), np.asarray(ref),
                               rtol=2e-2, atol=3e-2)

    print("KERNEL_OK")
</pallas_src>

<mosaic_0001>
module attributes {stable_mosaic.version = 11 : i64} {
  func.func @_stem_kernel(%arg0: i32, %arg1: memref<32x48xbf16, #tpu.memory_space<vmem>>, %arg2: memref<48x128xbf16, #tpu.memory_space<vmem>>, %arg3: memref<32x1xf32, #tpu.memory_space<vmem>>, %arg4: memref<32x1xf32, #tpu.memory_space<vmem>>, %arg5: memref<32x128xbf16, #tpu.memory_space<vmem>>) attributes {dimension_semantics = [#tpu.dimension_semantics<parallel>], iteration_bounds = array<i64: 1>, scalar_prefetch = 0 : i64, scratch_operands = 0 : i64, tpu.core_type = #tpu.core_type<tc>, window_params = [{pipeline_mode = #tpu.pipeline_mode<synchronous>, transform_indices = @transform_0, window_bounds = array<i64: 32, 48>}, {transform_indices = @transform_1, window_bounds = array<i64: 48, 128>}, {pipeline_mode = #tpu.pipeline_mode<synchronous>, transform_indices = @transform_2, window_bounds = array<i64: 32, 1>}, {pipeline_mode = #tpu.pipeline_mode<synchronous>, transform_indices = @transform_3, window_bounds = array<i64: 32, 1>}, {transform_indices = @transform_4, window_bounds = array<i64: 32, 128>}]} {
    %c0 = arith.constant 0 : index
    %c0_0 = arith.constant 0 : index
    %0 = vector.load %arg1[%c0, %c0_0] : memref<32x48xbf16, #tpu.memory_space<vmem>>, vector<32x48xbf16>
    %c0_1 = arith.constant 0 : index
    %c0_2 = arith.constant 0 : index
    %1 = vector.load %arg2[%c0_1, %c0_2] : memref<48x128xbf16, #tpu.memory_space<vmem>>, vector<48x128xbf16>
    %cst = arith.constant dense<0.000000e+00> : vector<32x128xf32>
    %2 = tpu.matmul %0, %1, %cst {dimension_numbers = #tpu.dot_dimension_numbers<[1], [0], [0], [1], [0, 0, 1, 1], [], []>} : vector<32x48xbf16>, vector<48x128xbf16>, vector<32x128xf32> -> vector<32x128xf32>
    %c0_3 = arith.constant 0 : index
    %c0_4 = arith.constant 0 : index
    %3 = vector.load %arg3[%c0_3, %c0_4] : memref<32x1xf32, #tpu.memory_space<vmem>>, vector<32x1xf32>
    %4 = vector.broadcast %3 : vector<32x1xf32> to vector<32x128xf32>
    %5 = arith.mulf %2, %4 : vector<32x128xf32>
    %c0_5 = arith.constant 0 : index
    %c0_6 = arith.constant 0 : index
    %6 = vector.load %arg4[%c0_5, %c0_6] : memref<32x1xf32, #tpu.memory_space<vmem>>, vector<32x1xf32>
    %7 = vector.broadcast %6 : vector<32x1xf32> to vector<32x128xf32>
    %8 = arith.addf %5, %7 : vector<32x128xf32>
    %9 = arith.negf %8 : vector<32x128xf32>
    %10 = math.exp %9 : vector<32x128xf32>
    %cst_7 = arith.constant 1.000000e+00 : f32
    %11 = vector.broadcast %cst_7 : f32 to vector<32x128xf32>
    %12 = arith.addf %11, %10 : vector<32x128xf32>
    %13 = arith.divf %11, %12 : vector<32x128xf32>
    %14 = arith.mulf %8, %13 : vector<32x128xf32>
    %15 = arith.truncf %14 : vector<32x128xf32> to vector<32x128xbf16>
    %c0_8 = arith.constant 0 : index
    %c0_9 = arith.constant 0 : index
    %16 = vector.load %arg5[%c0_8, %c0_9] : memref<32x128xbf16, #tpu.memory_space<vmem>>, vector<32x128xbf16>
    tpu.vector_store %arg5[%c0_8, %c0_9], %15 {strides = array<i32>} : memref<32x128xbf16, #tpu.memory_space<vmem>>, vector<32x128xbf16>,
    return
  }
  func.func @transform_0(%arg0: i32) -> (i32, i32) {
    %c0_i32 = arith.constant 0 : i32
    %c0_i32_0 = arith.constant 0 : i32
    %c0_i32_1 = arith.constant 0 : i32
    return %c0_i32, %c0_i32_0 : i32, i32
  }
  func.func @transform_1(%arg0: i32) -> (i32, i32) {
    %c0_i32 = arith.constant 0 : i32
    %c0_i32_0 = arith.constant 0 : i32
    return %c0_i32, %arg0 : i32, i32
  }
  func.func @transform_2(%arg0: i32) -> (i32, i32) {
    %c0_i32 = arith.constant 0 : i32
    %c0_i32_0 = arith.constant 0 : i32
    %c0_i32_1 = arith.constant 0 : i32
    return %c0_i32, %c0_i32_0 : i32, i32
  }
  func.func @transform_3(%arg0: i32) -> (i32, i32) {
    %c0_i32 = arith.constant 0 : i32
    %c0_i32_0 = arith.constant 0 : i32
    %c0_i32_1 = arith.constant 0 : i32
    return %c0_i32, %c0_i32_0 : i32, i32
  }
  func.func @transform_4(%arg0: i32) -> (i32, i32) {
    %c0_i32 = arith.constant 0 : i32
    %c0_i32_0 = arith.constant 0 : i32
    return %c0_i32, %arg0 : i32, i32
  }
}

</mosaic_0001>

<bundles_post_ra>
// kernel: tpu_custom_call.1
= control target key start
LH: loop header
LB: loop body
LE: loop exit
PB: predicated region body
PF: predicated region fallthrough
CT: control target
= control target key end

     0   :  { %vm57_vm0 = vcmask 392192   ;;  %v329_v2 = vmov 0   ;;  %s411_s0 = inlined_call_operand.vmem [shape: bf16[32,48], index: 0, kind: input, shape index: {}]   ;;  %s412_s1 = inlined_call_operand.vmem [shape: bf16[48,128], index: 1, kind: input, shape index: {}]   ;;  %s413_s2 = inlined_call_operand.vmem [shape: f32[32,1], index: 2, kind: input, shape index: {}]   ;;  %s414_s3 = inlined_call_operand.vmem [shape: f32[32,1], index: 3, kind: input, shape index: {}]   ;;  %s415_s4 = inlined_call_operand.hbm [shape: bf16[32,128], index: 4, kind: output, shape index: {}]  }
   0x1   :  { %v284_v0 = vld [vmem:[%s412_s1] sm:$0xff]   ;;  %v285_v1 = vld [vmem:[%s412_s1 + $0x8] sm:$0xff]   ;;  %283 = vset.pattern.permute.xlu1 %v329_v2  ;;  %282 = vset.pattern.permute.xlu0 %v329_v2  ;;  %v286_v4 = vld [vmem:[%s412_s1 + $0x10] sm:$0xff]  }
   0x2   :  { %268 = vmatprep.subr.bf16.mxu0 %v284_v0  ;;  %v287_v3 = vld [vmem:[%s411_s0] sm:$0xff]   ;;  %v115_v5 = vld [vmem:[%s413_s2 + $0x10] sm:$0xff]  ;;  %v116_v7 = vld [vmem:[%s413_s2 + $0x18] sm:$0xff] }
   0x3   :  { %269 = vmatpush3.bf16.msra.mxu0 %v284_v0  ;;  %274 = vmatprep.mubr.msk.bf16.mxu0 %vm57_vm0, %v287_v3  ;;  %v113_v6 = vld [vmem:[%s413_s2] sm:$0xff]  ;;  %v114_v8 = vld [vmem:[%s413_s2 + $0x8] sm:$0xff] }
   0x4   :  { %270 = vmatprep.subr.bf16.mxu0 %v285_v1  ;;  %129 = vperm.xlu1 %283, %v115_v5  }
   0x5   :  { %119 = vperm.xlu0 %282, %v113_v6  }
   0x7   :  { %271 = vmatpush3.bf16.msra.mxu0 %v285_v1 }
   0x8   :  { %9 = vsyncpa [#allocation3], 0  ;;  %272 = vmatprep.subr.bf16.mxu0 %v286_v4  ;;  %v288_v9 = vld [vmem:[%s411_s0 + $0x8] sm:$0xff]   ;;  %134 = vperm.xlu1 %283, %v116_v7   ;;  %v141_v11 = vld [vmem:[%s414_s3] sm:$0xff] }
   0x9   :  { %124 = vperm.xlu0 %282, %v114_v8   ;;  %v142_v10 = vld [vmem:[%s414_s3 + $0x8] sm:$0xff]  ;;  %v144_v12 = vld [vmem:[%s414_s3 + $0x18] sm:$0xff]  ;;  %v143_v13 = vld [vmem:[%s414_s3 + $0x10] sm:$0xff]  ;;  %s330_s3 = smov [#allocation2]  }
   0xa   :  { %s222_s12 = sshll.u32 %s330_s3, 4  ;;  %s223_s12 = int_to_ptr.vmem [resolvable:$true] %s222_s12 }
   0xb   :  { %273 = vmatpush3.bf16.msra.mxu0 %v286_v4  ;;  %s305_s13 = scalar_lea.vmem %s223_s12, 256  ;;  %p310_p1 = scmp.lt.s32.totalorder %s223_s12, %s223_s12 }
   0xc   :  { %152 = vperm.xlu1 %283, %v142_v10   ;;  %p306_p0 = scmp.ne.s32.totalorder %s223_s12, %s305_s13  ;;  %p311_p2 = scmp.lt.s32.totalorder %s305_s13, %s305_s13 }
   0xd   :  { %147 = vperm.xlu0 %282, %v141_v11  }
   0xe   :  { %275 = vmatmul.mubr.msk.bf16.vlgmr.msra.gmra.mrb[0].mxu0 %vm57_vm0, %v288_v9  ;;  %p312_p3 = por %p311_p2, %p310_p1 }
  0x10   :  { %162 = vperm.xlu1 %283, %v144_v12   ;;  %p313_p4 = pnand %p312_p3, %p306_p0 }
  0x11   :  { %157 = vperm.xlu0 %282, %v143_v13  }
  0x83   :  { %v130_v15 = vpop.permute.xlu1 %129 }
  0x84   :  { %v120_v14 = vpop.permute.xlu0 %119 }
  0x87   :  { %v135_v17 = vpop.permute.xlu1 %134 }
  0x88   :  { %v125_v16 = vpop.permute.xlu0 %124 }
  0x8b   :  { %v153_v19 = vpop.permute.xlu1 %152 }
  0x8c   :  { %v148_v18 = vpop.permute.xlu0 %147 }
  0x8f   :  { %v163_v29 = vpop.permute.xlu1 %162 }
  0x90   :  { %v158_v23 = vpop.permute.xlu0 %157 }
  0xe1   :  { %v276_v20 = vpop.f32.mrb[0].mxu0 }
  0xe2   :  { %v139_v21 = vmul.f32 %v276_v20, %v130_v15  ;;  %v98_v22 = vpop.f32.mrb[1].mxu0 }
  0xe3   :  { %v137_v24 = vmul.f32 %v120_v14, %v98_v22  ;;  %v277_v25 = vpop.f32.mrb[2].mxu0 }
  0xe4   :  { %v167_v26 = vadd.f32 %v158_v23, %v139_v21  ;;  %v140_v27 = vmul.f32 %v277_v25, %v135_v17  ;;  %v101_v28 = vpop.f32.mrb[3].mxu0 }
  0xe5   :  { %v165_v30 = vadd.f32 %v148_v18, %v137_v24  ;;  %v138_v31 = vmul.f32 %v125_v16, %v101_v28 }
  0xe6   :  { %v242_v32 = vmul.f32 -1.442695, %v167_v26  ;;  %v168_v33 = vadd.f32 %v163_v29, %v140_v27 }
  0xe7   :  { %v240_v34 = vmul.f32 -1.442695, %v165_v30  ;;  %v166_v35 = vadd.f32 %v153_v19, %v138_v31 }
  0xe8   :  { %289 = vpow2.f32 %v242_v32  ;;  %v243_v36 = vmul.f32 -1.442695, %v168_v33 }
  0xe9   :  { %291 = vpow2.f32 %v240_v34  ;;  %v241_v37 = vmul.f32 -1.442695, %v166_v35 }
  0xea   :  { %293 = vpow2.f32 %v243_v36 }
  0xeb   :  { %295 = vpow2.f32 %v241_v37 }
  0xf2   :  { %v290_v38 = vpop.eup %289 }
  0xf3   :  { %v292_v39 = vpop.eup %291  ;;  %v183_v40 = vadd.f32 1.0, %v290_v38 }
  0xf4   :  { %v294_v41 = vpop.eup %293  ;;  %v181_v42 = vadd.f32 1.0, %v292_v39 }
  0xf5   :  { %v296_v43 = vpop.eup %295  ;;  %297 = vrcp.f32 %v183_v40  ;;  %v184_v44 = vadd.f32 1.0, %v294_v41 }
  0xf6   :  { %299 = vrcp.f32 %v181_v42  ;;  %v182_v45 = vadd.f32 1.0, %v296_v43 }
  0xf7   :  { %301 = vrcp.f32 %v184_v44 }
  0xf8   :  { %303 = vrcp.f32 %v182_v45 }
  0xff   :  { %v298_v46 = vpop.eup %297 }
 0x100   :  { %v300_v47 = vpop.eup %299  ;;  %v195_v50 = vmul.f32 %v298_v46, %v167_v26 }
 0x101   :  { %v302_v48 = vpop.eup %301  ;;  %v193_v52 = vmul.f32 %v300_v47, %v165_v30 }
 0x102   :  { %v304_v49 = vpop.eup %303  ;;  %v196_v51 = vmul.f32 %v302_v48, %v168_v33 }
 0x103   :  { %v194_v53 = vmul.f32 %v304_v49, %v166_v35 }
 0x104   :  { %v260_v54 = vpack.c.bf16 %v196_v51, %v195_v50 }
 0x105   :  { %v255_v55 = vpack.c.bf16 %v194_v53, %v193_v52 }
 0x106   :  { %262 = vst [vmem:[#allocation2 + $0x8] sm:$0xff] %v260_v54  }
 0x107   :  { %256 = vst [vmem:[#allocation2] sm:$0xff] %v255_v55  }
 0x108   :  { %316 = shalt.err (!%p313_p4)
}
 0x109   :  { %s317_s16 = scalar_lea.hbm %s415_s4, 256 }
 0x10a   :  { %p318_p5 = scmp.ne.s32.totalorder %s415_s4, %s317_s16  ;;  %p321_p6 = scmp.lt.u32.totalorder %s317_s16, %s415_s4 }
 0x10c   :  { %p323_p7 = pnand %p321_p6, %p318_p5 }
 0x10e   :  { %326 = shalt.err (!%p323_p7)
}
 0x10f   :  { %s331_s21 = smov 64   ;;  %s332_s22 = smov 4  }
 0x110   :  { %228 = dma.vmem_to_hbm [thread:$0]  %s223_s12, 256, %s415_s4, [#allocation3], %s331_s21, %s331_s21, %s332_s22  }
 0x111   :  { %327 = dma.done.wait [#allocation3], 256  }
 0x112   :  { %328 = vsyncadd [#allocation3], 4294967040 }
 0x113   :  { %232 = vsyncpa [#allocation3], 1 }

</bundles_post_ra>
